<compile_context>
chip_gen: v7x
topology: tpu7x:2x2x1
jax: 0.10.0
libtpu: 0.0.40
codegen_flags: <defaults>
</compile_context>

<pallas_src>
import functools

import jax
import jax.numpy as jnp
from jax.experimental import pallas as pl
from jax.experimental.pallas import tpu as pltpu


def _round_up(x, m):
    return ((x + m - 1) // m) * m


def _hm_kernel(xy_ref, pxy_ref, hm_ref, *, neg_c):
    """One grid step: a (TILE_NK, TILE_HW) slab of heatmap rows."""
    xs = xy_ref[0:1, :]          # (1, TILE_HW)  x pixel coord of each flat pixel
    ys = xy_ref[1:2, :]          # (1, TILE_HW)  y pixel coord of each flat pixel
    px = pxy_ref[:, 0:1]         # (TILE_NK, 1)  keypoint x (invalid -> far away)
    py = pxy_ref[:, 1:2]         # (TILE_NK, 1)  keypoint y
    dx = xs - px                 # broadcast to (TILE_NK, TILE_HW)
    dy = ys - py
    dist = dx * dx + dy * dy
    # TODO(synk): on v7x (VALU-bound) exploit Gaussian separability
    # (exp_x (nk,W) outer exp_y (nk,H) combined via tile/repeat) to cut VALU to
    # ~1 op/element and EUP exps to H+W per keypoint; skipped here to avoid the
    # in-kernel (nk,H,W)->(nk,H*W) relayout risk.
    hm_ref[...] = jnp.exp(dist * neg_c).astype(hm_ref.dtype)


def hm_generator(key_points_2d, hm_size=(16, 16), sigma=7.0, num_kp=4,
                 out_dtype=jnp.float32, min_pallas_bytes=1 << 20):
    """JAX/Pallas equivalent of HM_Generator_cuda.forward.

    Args:
      key_points_2d: (nb, num_kp, 3); [..., :2] normalized xy, [..., 2] validity
        code (valid iff < 3).
    Returns:
      hm: (nb, num_kp, H, W) out_dtype, valid: (nb, num_kp) float32.
    """
    W, H = int(hm_size[0]), int(hm_size[1])
    sig = max(H, W) / 368.0 * float(sigma)
    c = 1.0 / (2.0 * sig * sig)
    hw = H * W

    nb = key_points_2d.shape[0]
    nk = nb * num_kp
    kp = key_points_2d.reshape(nk, 3).astype(jnp.float32)
    valid_out = (key_points_2d[..., 2] < 3.0).astype(jnp.float32).reshape(nb, num_kp)

    out_bytes = nb * num_kp * hw * jnp.dtype(out_dtype).itemsize
    if out_bytes < min_pallas_bytes:
        # Small-problem fast path: XLA fusion beats a pallas_call launch here.
        px = (kp[:, 0] * W).reshape(nb, num_kp, 1, 1)
        py = (kp[:, 1] * H).reshape(nb, num_kp, 1, 1)
        v = (kp[:, 2] < 3.0).astype(jnp.float32).reshape(nb, num_kp, 1, 1)
        xs = jnp.arange(W, dtype=jnp.float32).reshape(1, 1, 1, W)
        ys = jnp.arange(H, dtype=jnp.float32).reshape(1, 1, H, 1)
        dist = (xs - px) ** 2 + (ys - py) ** 2
        hm = (jnp.exp(dist * (-c)) * v).astype(out_dtype)
        return hm, valid_out

    # ---- tiling -------------------------------------------------------------
    TARGET_BLOCK_BYTES = 3 << 20            # ~3 MiB f32 output block

    nk8 = _round_up(nk, 8)
    hw128 = _round_up(hw, 128)

    # Lane (H*W) axis: tile to a multiple of 128, capped so even an 8-row block
    # stays within the byte target (protects v7x's 64 MiB VMEM for huge maps).
    max_tile_hw = max(128, (TARGET_BLOCK_BYTES // (8 * 4)) // 128 * 128)
    n_hw = int(pl.cdiv(hw128, max_tile_hw))
    tile_hw = _round_up(int(pl.cdiv(hw128, n_hw)), 128)
    hw_pad = n_hw * tile_hw

    # Keypoint (row) axis: as big as the byte budget allows; guarantee >= 2 grid
    # steps when there is enough work so both v7x TensorCores get tiles.
    rows_by_bytes = max(8, (TARGET_BLOCK_BYTES // (tile_hw * 4)) // 8 * 8)
    min_row_tiles = 2 if (n_hw == 1 and nk8 >= 16) else 1
    rows_by_split = _round_up(int(pl.cdiv(nk8, min_row_tiles)), 8)
    tile_nk = int(min(rows_by_bytes, rows_by_split, nk8))
    n_rows = int(pl.cdiv(nk, tile_nk))
    nk_pad = n_rows * tile_nk

    # ---- inputs -------------------------------------------------------------
    px = kp[:, 0] * W
    py = kp[:, 1] * H
    valid_b = kp[:, 2] < 3.0
    # Fold validity into the coordinate: shift invalid keypoints far enough that
    # dist*c >= 110 => exp underflows to exactly 0 (finite in f32 for any sigma).
    big = float(W) + (110.0 / c) ** 0.5
    px = jnp.where(valid_b, px, big)
    pxy = jnp.stack([px, py], axis=-1)                       # (nk, 2)
    if nk_pad > nk:
        pxy = jnp.concatenate(
            [pxy, jnp.zeros((nk_pad - nk, 2), jnp.float32)], axis=0)

    # Flattened pixel coordinates, row-major over (H, W): y slow, x fast.
    xs_row = jnp.tile(jnp.arange(W, dtype=jnp.float32), H)
    ys_row = jnp.repeat(jnp.arange(H, dtype=jnp.float32), W)
    xy = jnp.stack([xs_row, ys_row], axis=0)                 # (2, hw)
    if hw_pad > hw:
        xy = jnp.concatenate(
            [xy, jnp.zeros((2, hw_pad - hw), jnp.float32)], axis=1)

    # ---- VMEM budget: 2x output block (double buffer) + ~4 f32 temporaries ---
    block_f32 = tile_nk * tile_hw * 4
    vmem_limit = int(min(96 << 20, max(32 << 20, 8 * block_f32)))

    hm_flat = pl.pallas_call(
        functools.partial(_hm_kernel, neg_c=-c),
        out_shape=jax.ShapeDtypeStruct((nk_pad, hw_pad), out_dtype),
        grid=(n_rows, n_hw),
        in_specs=[
            pl.BlockSpec((2, tile_hw), lambda i, j: (0, j)),       # xy coord rows
            pl.BlockSpec((tile_nk, 2), lambda i, j: (i, 0)),       # packed px/py
        ],
        out_specs=pl.BlockSpec((tile_nk, tile_hw), lambda i, j: (i, j)),
        compiler_params=pltpu.CompilerParams(
            dimension_semantics=("parallel", "parallel"),
            vmem_limit_bytes=vmem_limit,
        ),
    )(xy, pxy)

    hm = hm_flat[:nk, :hw].reshape(nb, num_kp, H, W)
    return hm, valid_out


def _reference(key_points_2d, hm_size=(16, 16), sigma=7.0, num_kp=4):
    """Pure-JAX reference mirroring the PyTorch forward exactly."""
    W, H = int(hm_size[0]), int(hm_size[1])
    sigma = max(H, W) / 368.0 * float(sigma)
    nb = key_points_2d.shape[0]

    x_m = jnp.tile(jnp.arange(W, dtype=jnp.float32), (num_kp, H, 1))
    y_m = jnp.tile(jnp.arange(H, dtype=jnp.float32), (num_kp, W, 1)).transpose(0, 2, 1)
    blk_hm = jnp.stack([x_m, y_m], -1).reshape(1, num_kp, H, W, 2)
    scale = jnp.array([W, H], dtype=jnp.float32).reshape(1, 1, 2)

    pt_xy = (key_points_2d[..., :2] * scale).reshape(nb, num_kp, 1, 1, 2)
    pt_valid = key_points_2d[..., 2]
    dist = ((blk_hm - pt_xy) ** 2).sum(-1)
    hm = jnp.exp(-dist / (2 * sigma * sigma)) * (
        pt_valid.reshape(nb, num_kp, 1, 1) < 3
    ).astype(jnp.float32)
    return hm, (pt_valid < 3).astype(jnp.float32).reshape(nb, num_kp)


if __name__ == "__main__":
    key = jax.random.PRNGKey(0)

    def make_inputs(k, nb, num_kp):
        kxy, kval = jax.random.split(k)
        xy = jax.random.uniform(kxy, (nb, num_kp, 2), dtype=jnp.float32)
        # validity codes in [0, 6): some < 3 (valid), some >= 3 (invalid)
        val = jax.random.uniform(kval, (nb, num_kp, 1), dtype=jnp.float32) * 6.0
        return jnp.concatenate([xy, val], axis=-1)

    k1, k2 = jax.random.split(key)

    # Config 1: tiny (batch=2, num_kp=4, 16x16). Check both the small-problem
    # fast path (default threshold) and the forced Pallas kernel.
    kp1 = make_inputs(k1, 2, 4)
    hm_fast, valid_fast = hm_generator(kp1, hm_size=(16, 16), sigma=7.0, num_kp=4)
    hm_pal, valid_pal = hm_generator(kp1, hm_size=(16, 16), sigma=7.0, num_kp=4,
                                     min_pallas_bytes=0)   # force the kernel
    hm_pal = jax.block_until_ready(hm_pal)
    hm_ref, valid_ref = _reference(kp1, hm_size=(16, 16), sigma=7.0, num_kp=4)
    assert hm_pal.shape == (2, 4, 16, 16)
    assert valid_pal.shape == (2, 4)
    assert jnp.allclose(hm_fast, hm_ref, atol=1e-5, rtol=1e-5)
    assert jnp.allclose(hm_pal, hm_ref, atol=1e-5, rtol=1e-5)
    assert jnp.allclose(valid_fast, valid_ref)
    assert jnp.allclose(valid_pal, valid_ref)

    # Config 2: exercises lane padding (40*40=1600, not a multiple of 128),
    # keypoint-row padding (2*21=42 -> 48) and a multi-step parallel grid.
    kp2 = make_inputs(k2, 2, 21)
    hm2, valid2 = hm_generator(kp2, hm_size=(40, 40), sigma=7.0, num_kp=21,
                               min_pallas_bytes=0)          # force the kernel
    hm2 = jax.block_until_ready(hm2)
    hm2_ref, valid2_ref = _reference(kp2, hm_size=(40, 40), sigma=7.0, num_kp=21)
    assert hm2.shape == (2, 21, 40, 40)
    assert jnp.allclose(hm2, hm2_ref, atol=1e-5, rtol=1e-5)
    assert jnp.allclose(valid2, valid2_ref)

    print("KERNEL_OK")
</pallas_src>

<mosaic_0001>
module attributes {stable_mosaic.version = 11 : i64} {
  func.func @_hm_kernel(%arg0: i32, %arg1: i32, %arg2: memref<2x256xf32, #tpu.memory_space<vmem>>, %arg3: memref<8x2xf32, #tpu.memory_space<vmem>>, %arg4: memref<8x256xf32, #tpu.memory_space<vmem>>) attributes {dimension_semantics = [#tpu.dimension_semantics<parallel>, #tpu.dimension_semantics<parallel>], iteration_bounds = array<i64: 1, 1>, scalar_prefetch = 0 : i64, scratch_operands = 0 : i64, tpu.core_type = #tpu.core_type<tc>, window_params = [{transform_indices = @transform_0, window_bounds = array<i64: 2, 256>}, {transform_indices = @transform_1, window_bounds = array<i64: 8, 2>}, {transform_indices = @transform_2, window_bounds = array<i64: 8, 256>}]} {
    %c0 = arith.constant 0 : index
    %c0_0 = arith.constant 0 : index
    %0 = vector.load %arg2[%c0, %c0_0] : memref<2x256xf32, #tpu.memory_space<vmem>>, vector<1x256xf32>
    %c1 = arith.constant 1 : index
    %c0_1 = arith.constant 0 : index
    %1 = vector.load %arg2[%c1, %c0_1] : memref<2x256xf32, #tpu.memory_space<vmem>>, vector<1x256xf32>
    %c0_2 = arith.constant 0 : index
    %c0_3 = arith.constant 0 : index
    %2 = vector.load %arg3[%c0_2, %c0_3] : memref<8x2xf32, #tpu.memory_space<vmem>>, vector<8x1xf32>
    %c0_4 = arith.constant 0 : index
    %c1_5 = arith.constant 1 : index
    %3 = vector.load %arg3[%c0_4, %c1_5] : memref<8x2xf32, #tpu.memory_space<vmem>>, vector<8x1xf32>
    %4 = vector.broadcast %0 : vector<1x256xf32> to vector<8x256xf32>
    %5 = vector.broadcast %2 : vector<8x1xf32> to vector<8x256xf32>
    %6 = arith.subf %4, %5 : vector<8x256xf32>
    %7 = vector.broadcast %1 : vector<1x256xf32> to vector<8x256xf32>
    %8 = vector.broadcast %3 : vector<8x1xf32> to vector<8x256xf32>
    %9 = arith.subf %7, %8 : vector<8x256xf32>
    %10 = arith.mulf %6, %6 : vector<8x256xf32>
    %11 = arith.mulf %9, %9 : vector<8x256xf32>
    %12 = arith.addf %10, %11 : vector<8x256xf32>
    %cst = arith.constant -5.39795923 : f32
    %13 = vector.broadcast %cst : f32 to vector<8x256xf32>
    %14 = arith.mulf %12, %13 : vector<8x256xf32>
    %15 = math.exp %14 : vector<8x256xf32>
    %c0_6 = arith.constant 0 : index
    %c0_7 = arith.constant 0 : index
    %16 = vector.load %arg4[%c0_6, %c0_7] : memref<8x256xf32, #tpu.memory_space<vmem>>, vector<8x256xf32>
    tpu.vector_store %arg4[%c0_6, %c0_7], %15 {strides = array<i32>} : memref<8x256xf32, #tpu.memory_space<vmem>>, vector<8x256xf32>,
    return
  }
  func.func @transform_0(%arg0: i32, %arg1: i32) -> (i32, i32) {
    %c0_i32 = arith.constant 0 : i32
    %c0_i32_0 = arith.constant 0 : i32
    return %c0_i32, %arg1 : i32, i32
  }
  func.func @transform_1(%arg0: i32, %arg1: i32) -> (i32, i32) {
    %c0_i32 = arith.constant 0 : i32
    %c0_i32_0 = arith.constant 0 : i32
    return %arg0, %c0_i32 : i32, i32
  }
  func.func @transform_2(%arg0: i32, %arg1: i32) -> (i32, i32) {
    %c0_i32 = arith.constant 0 : i32
    return %arg0, %arg1 : i32, i32
  }
}

</mosaic_0001>

<bundles_post_ra>
// kernel: tpu_custom_call.1
= control target key start
LH: loop header
LB: loop body
LE: loop exit
PB: predicated region body
PF: predicated region fallthrough
CT: control target
= control target key end

     0   :  { %v113_v1 = vmov 0   ;;  %s152_s0 = inlined_call_operand.vmem [shape: f32[2,256], index: 0, kind: input, shape index: {}]   ;;  %s153_s1 = inlined_call_operand.vmem [shape: f32[8,2], index: 1, kind: input, shape index: {}]   ;;  %s154_s2 = inlined_call_operand.hbm [shape: f32[8,256], index: 2, kind: output, shape index: {}]  }
   0x1   :  { %v15_v0 = vld [vmem:[%s153_s1] sm:$0xff]  ;;  %83 = vset.pattern.permute.xlu0 %v113_v1 }
   0x2   :  { %7 = vsyncpa [#allocation3], 0  ;;  %29 = vperm.xlu0 %83, %v15_v0   ;;  %v114_v2 = vmov 1   ;;  %v17_v3 = vlaneseq  ;;  %v12_v7 = vld [vmem:[%s152_s0] ss:$2 sm:$0x3] }
   0x3   :  { %v79_v8 = vld [vmem:[%s152_s0 + $0x1] ss:$2 sm:$0x3]  ;;  %s115_s0 = smov [#allocation2]  }
   0x4   :  { %v18_v4 = vshrl.u32 %v17_v3, 7  ;;  %s71_s1 = sshll.u32 %s115_s0, 4  ;;  %s72_s1 = int_to_ptr.vmem [resolvable:$true] %s71_s1 }
   0x5   :  { %s89_s15 = scalar_lea.vmem %s72_s1, 256  ;;  %p94_p1 = scmp.lt.s32.totalorder %s72_s1, %s72_s1 }
   0x6   :  { %84 = vset.pattern.permute.xlu0 %v114_v2  ;;  %v19_v5 = vsub.s32 0, %v18_v4  ;;  %v23_v6 = vsub.s32 1, %v18_v4  ;;  %p90_p0 = scmp.ne.s32.totalorder %s72_s1, %s89_s15  ;;  %p95_p2 = scmp.lt.s32.totalorder %s89_s15, %s89_s15 }
   0x7   :  { %46 = vperm.xlu0 %84, %v15_v0  }
   0x8   :  { %v20_v10 = vrot.slane %v12_v7, %v19_v5  ;;  %v24_v11 = vrot.slane %v12_v7, %v23_v6  ;;  %v38_v12 = vrot.slane %v79_v8, %v19_v5  ;;  %v42_v13 = vrot.slane %v79_v8, %v23_v6  ;;  %p96_p3 = por %p95_p2, %p94_p1 }
   0xa   :  { %p97_p4 = pnand %p96_p3, %p90_p0 }
  0x81   :  { %v30_v9 = vpop.permute.xlu0 %29 }
  0x82   :  { %v32_v14 = vsub.f32 %v20_v10, %v30_v9  ;;  %v33_v15 = vsub.f32 %v24_v11, %v30_v9 }
  0x84   :  { %v51_v19 = vmul.f32 %v32_v14, %v32_v14  ;;  %v52_v20 = vmul.f32 %v33_v15, %v33_v15 }
  0x86   :  { %v47_v16 = vpop.permute.xlu0 %46 }
  0x87   :  { %v49_v17 = vsub.f32 %v38_v12, %v47_v16  ;;  %v50_v18 = vsub.f32 %v42_v13, %v47_v16 }
  0x89   :  { %v53_v21 = vmul.f32 %v49_v17, %v49_v17  ;;  %v54_v22 = vmul.f32 %v50_v18, %v50_v18 }
  0x8b   :  { %v55_v23 = vadd.f32 %v53_v21, %v51_v19  ;;  %v56_v24 = vadd.f32 %v54_v22, %v52_v20 }
  0x8d   :  { %v57_v25 = vmul.f32 -5.397959, %v55_v23  ;;  %v58_v26 = vmul.f32 -5.397959, %v56_v24 }
  0x8f   :  { %v59_v27 = vmul.f32 1.442695, %v57_v25  ;;  %v61_v28 = vmul.f32 1.442695, %v58_v26 }
  0x91   :  { %85 = vpow2.f32 %v59_v27 }
  0x92   :  { %87 = vpow2.f32 %v61_v28 }
  0x9b   :  { %v86_v29 = vpop.eup %85 }
  0x9c   :  { %v88_v30 = vpop.eup %87  ;;  %63 = vst [vmem:[#allocation2] sm:$0xff] %v86_v29 }
  0x9d   :  { %64 = vst [vmem:[#allocation2 + $0x8] sm:$0xff] %v88_v30 }
  0x9e   :  { %100 = shalt.err (!%p97_p4)
}
  0x9f   :  { %s101_s18 = scalar_lea.hbm %s154_s2, 256 }
  0xa0   :  { %p102_p5 = scmp.ne.s32.totalorder %s154_s2, %s101_s18  ;;  %p105_p6 = scmp.lt.u32.totalorder %s101_s18, %s154_s2 }
  0xa2   :  { %p107_p7 = pnand %p105_p6, %p102_p5 }
  0xa4   :  { %110 = shalt.err (!%p107_p7)
}
  0xa5   :  { %74 = dma.vmem_to_hbm [thread:$0]  %s72_s1, 256, %s154_s2, [#allocation3]  }
  0xa6   :  { %111 = dma.done.wait [#allocation3], 256  }
  0xa7   :  { %112 = vsyncadd [#allocation3], 4294967040 }
  0xa8   :  { %78 = vsyncpa [#allocation3], 1 }

</bundles_post_ra>
